<compile_context>
chip_gen: v7x
topology: tpu7x:2x2x1
jax: 0.10.0
libtpu: 0.0.40
codegen_flags: <defaults>
</compile_context>

<pallas_src>
import functools

import jax
import jax.numpy as jnp
from jax import lax
from jax.experimental import pallas as pl
from jax.experimental.pallas import tpu as pltpu

IGNORE_INDEX = -1
ROW_ALIGN = 16     # bf16 sublane packing
LANE_ALIGN = 128


# ---------------------------------------------------------------------------
# Generation-aware tile / VMEM policy
# ---------------------------------------------------------------------------
def _gen_caps():
    """(vmem_limit_bytes, tm_pref, tn_pref, tk_pref) per TPU generation."""
    vmem_phys = None
    try:
        vmem_phys = pltpu.get_tpu_info().vmem_capacity_bytes
    except Exception:
        pass
    if vmem_phys is not None and vmem_phys >= 96 * 1024 * 1024:
        # v5e / v6e: 128 MiB physical VMEM per TensorCore -> big tiles, big scoped limit.
        return {"vmem": 96 * 1024 * 1024, "tm": 1024, "tn": 512, "tk": 1024}
    # v7x (64 MiB per TC) or unknown: keep headroom for double-buffering.
    return {"vmem": 44 * 1024 * 1024, "tm": 1024, "tn": 256, "tk": 512}


def _pick_tile(total, pref, align):
    """Largest tile <= pref that is a multiple of `align` and divides `total`.
    Falls back to the full extent (always a legal block shape) if unaligned."""
    if total % align != 0 or total <= align:
        return total
    t = min(pref, total)
    t = max(align, (t // align) * align)
    while total % t != 0:
        t -= align
    return t


def _pick_row_tile_for_fused(n, pref, align=ROW_ALIGN):
    """Row tile for the fused-loss path: cap at ~N/2 so the (only) parallel grid
    axis gives both TensorCores work on v7x."""
    if n >= 2 * align:
        pref = min(pref, max(align, (n // 2 // align) * align))
    return _pick_tile(n, pref, align)


def _pad_axis(a, axis, multiple, value):
    size = a.shape[axis]
    pad = (-size) % multiple
    if pad == 0:
        return a
    widths = [(0, 0)] * a.ndim
    widths[axis] = (0, pad)
    return jnp.pad(a, widths, constant_values=value)


# ---------------------------------------------------------------------------
# Kernel 1: softmaxLayer (nn.Linear) — logits tile = x_tile @ W_tile^T + b_tile
#   grid = (rows, vocab, hidden); hidden (reduction) innermost with f32 accumulator.
# ---------------------------------------------------------------------------
def linear_tile_kernel(x_ref, w_ref, b_ref, o_ref, acc_ref):
    k = pl.program_id(2)

    @pl.when(k == 0)
    def _init():
        acc_ref[...] = jnp.zeros_like(acc_ref)

    # x_ref: (tm, tk) bf16, w_ref: (tn, tk) bf16 (PyTorch layout; trans_b contraction)
    acc_ref[...] += lax.dot_general(
        x_ref[...], w_ref[...], (((1,), (1,)), ((), ())),
        preferred_element_type=jnp.float32)

    @pl.when(k == pl.num_programs(2) - 1)
    def _finalize():
        # TODO(synk): emit bf16 logits here if downstream permits (halves store bytes on v5e).
        o_ref[...] = acc_ref[...] + b_ref[...]


def linear_forward(x, weight, bias, *, tm_pref=None, tn_pref=None, tk_pref=None):
    """x: (N, D), weight: (V, D) [PyTorch layout], bias: (V,) -> logits (N, V) f32."""
    n, d = x.shape
    v = weight.shape[0]
    caps = _gen_caps()

    # bf16 streaming + padding to legal tile multiples.
    x_p = _pad_axis(x.astype(jnp.bfloat16), 0, ROW_ALIGN, 0)
    w_p = _pad_axis(weight.astype(jnp.bfloat16), 0, LANE_ALIGN, 0)
    b_p = _pad_axis(bias.astype(jnp.float32), 0, LANE_ALIGN, 0.0).reshape(1, -1)
    n_p, v_p = x_p.shape[0], w_p.shape[0]

    tm = _pick_tile(n_p, tm_pref or caps["tm"], ROW_ALIGN)
    tn = _pick_tile(v_p, tn_pref or caps["tn"], LANE_ALIGN)
    tk = _pick_tile(d, tk_pref or caps["tk"], LANE_ALIGN)
    grid = (n_p // tm, v_p // tn, d // tk)

    cost = pl.CostEstimate(
        flops=2 * n_p * d * v_p,
        transcendentals=0,
        bytes_accessed=2 * (n_p * d * (v_p // tn) + v_p * d * (n_p // tm))
        + 4 * (n_p * v_p + v_p))

    out = pl.pallas_call(
        linear_tile_kernel,
        out_shape=jax.ShapeDtypeStruct((n_p, v_p), jnp.float32),
        grid_spec=pltpu.PrefetchScalarGridSpec(
            num_scalar_prefetch=0,
            grid=grid,
            in_specs=[
                pl.BlockSpec((tm, tk), lambda i, j, k: (i, k)),   # x row tile
                pl.BlockSpec((tn, tk), lambda i, j, k: (j, k)),   # weight vocab tile
                pl.BlockSpec((1, tn), lambda i, j, k: (0, j)),    # bias tile
            ],
            out_specs=pl.BlockSpec((tm, tn), lambda i, j, k: (i, j)),
            scratch_shapes=[pltpu.VMEM((tm, tn), jnp.float32)],
        ),
        compiler_params=pltpu.CompilerParams(
            dimension_semantics=("parallel", "parallel", "arbitrary"),
            vmem_limit_bytes=caps["vmem"],
        ),
        cost_estimate=cost,
    )(x_p, w_p, b_p)
    if n_p != n or v_p != v:
        out = out[:n, :v]
    return out


# ---------------------------------------------------------------------------
# Kernel 2: fused Linear + CrossEntropyLoss(size_average=False, ignore_index=-1)
#   Online logsumexp over vocab tiles; logits never hit HBM.
#   grid = (rows, vocab, hidden); hidden innermost (logits accumulation),
#   vocab middle (online-softmax reduction), rows parallel.
# ---------------------------------------------------------------------------
def fused_loss_kernel(x_ref, w_ref, b_ref, tgt_ref, loss_ref,
                      acc_ref, m_sc, l_sc, p_sc):
    j = pl.program_id(1)
    k = pl.program_id(2)
    nj = pl.num_programs(1)
    nk = pl.num_programs(2)
    tn = w_ref.shape[0]

    @pl.when(jnp.logical_and(j == 0, k == 0))
    def _init_row_state():
        m_sc[...] = jnp.full_like(m_sc, -jnp.inf)
        l_sc[...] = jnp.zeros_like(l_sc)
        p_sc[...] = jnp.zeros_like(p_sc)

    @pl.when(k == 0)
    def _init_acc():
        acc_ref[...] = jnp.zeros_like(acc_ref)

    acc_ref[...] += lax.dot_general(
        x_ref[...], w_ref[...], (((1,), (1,)), ((), ())),
        preferred_element_type=jnp.float32)

    @pl.when(k == nk - 1)
    def _softmax_update():
        logits = acc_ref[...] + b_ref[...]          # (tm, tn) f32; padded cols are -inf
        tgt = tgt_ref[...]                           # (tm, 1) i32

        # online logsumexp carry (per row)
        m_prev = m_sc[...]
        m_new = jnp.maximum(m_prev, jnp.max(logits, axis=-1, keepdims=True))
        alpha = jnp.exp(m_prev - m_new)
        l_sc[...] = alpha * l_sc[...] + jnp.sum(jnp.exp(logits - m_new),
                                                axis=-1, keepdims=True)
        m_sc[...] = m_new

        # one-hot pick of logits[i, target[i]]: compare plain lane iota to (tgt - j*tn)
        col = lax.broadcasted_iota(jnp.int32, logits.shape, 1)
        rel = tgt - j * tn
        p_sc[...] += jnp.sum(jnp.where(col == rel, logits, 0.0),
                             axis=-1, keepdims=True)

    @pl.when(jnp.logical_and(j == nj - 1, k == nk - 1))
    def _finalize():
        lse = m_sc[...] + jnp.log(l_sc[...])
        valid = (tgt_ref[...] != IGNORE_INDEX).astype(jnp.float32)
        loss_ref[...] = valid * (lse - p_sc[...])


def fused_loss_forward(x, weight, bias, target, *, tm_pref=None, tn_pref=None,
                       tk_pref=None):
    """Returns scalar summed cross-entropy loss (ignore_index rows masked)."""
    n, d = x.shape
    v = weight.shape[0]
    caps = _gen_caps()

    x_p = _pad_axis(x.astype(jnp.bfloat16), 0, ROW_ALIGN, 0)
    w_p = _pad_axis(weight.astype(jnp.bfloat16), 0, LANE_ALIGN, 0)
    # Padded vocab columns get bias = -inf so they contribute 0 to the logsumexp.
    b_p = _pad_axis(bias.astype(jnp.float32), 0, LANE_ALIGN, -jnp.inf).reshape(1, -1)
    tgt_p = _pad_axis(target.astype(jnp.int32), 0, ROW_ALIGN, IGNORE_INDEX).reshape(-1, 1)
    n_p, v_p = x_p.shape[0], w_p.shape[0]

    tm = _pick_row_tile_for_fused(n_p, tm_pref or caps["tm"], ROW_ALIGN)
    tn = _pick_tile(v_p, tn_pref or caps["tn"], LANE_ALIGN)
    tk = _pick_tile(d, tk_pref or caps["tk"], LANE_ALIGN)
    grid = (n_p // tm, v_p // tn, d // tk)   # vocab + hidden reductions innermost

    cost = pl.CostEstimate(
        flops=2 * n_p * d * v_p + 6 * n_p * v_p,
        transcendentals=n_p * v_p,
        bytes_accessed=2 * (n_p * d * (v_p // tn) + v_p * d * (n_p // tm))
        + 4 * (v_p + 2 * n_p))

    per_row = pl.pallas_call(
        fused_loss_kernel,
        out_shape=jax.ShapeDtypeStruct((n_p, 1), jnp.float32),
        grid_spec=pltpu.PrefetchScalarGridSpec(
            num_scalar_prefetch=0,
            grid=grid,
            in_specs=[
                pl.BlockSpec((tm, tk), lambda i, j, k: (i, k)),   # x row tile
                pl.BlockSpec((tn, tk), lambda i, j, k: (j, k)),   # weight vocab tile
                pl.BlockSpec((1, tn), lambda i, j, k: (0, j)),    # bias tile
                pl.BlockSpec((tm, 1), lambda i, j, k: (i, 0)),    # targets (resident)
            ],
            out_specs=pl.BlockSpec((tm, 1), lambda i, j, k: (i, 0)),
            scratch_shapes=[
                pltpu.VMEM((tm, tn), jnp.float32),   # logits accumulator over k
                pltpu.VMEM((tm, 1), jnp.float32),    # running max
                pltpu.VMEM((tm, 1), jnp.float32),    # running sum-exp
                pltpu.VMEM((tm, 1), jnp.float32),    # picked target logit
            ],
        ),
        compiler_params=pltpu.CompilerParams(
            dimension_semantics=("parallel", "arbitrary", "arbitrary"),
            vmem_limit_bytes=caps["vmem"],
        ),
        cost_estimate=cost,
    )(x_p, w_p, b_p, tgt_p)
    # Padded rows carry ignore_index -> exactly 0.  Tiny (N,) reduction stays in XLA.
    return jnp.sum(per_row)


# ---------------------------------------------------------------------------
# WordPredictor forward
# ---------------------------------------------------------------------------
# TODO(synk): bf16 input/weight streaming gives ~1e-2 relative deviation from the f32
# PyTorch reference; add an f32 fallback flag if exact parity is ever required.
@functools.partial(jax.jit,
                   static_argnames=("with_target", "tm_pref", "tn_pref", "tk_pref"))
def word_predictor_forward(x, weight, bias, target=None, *, with_target=False,
                           tm_pref=None, tn_pref=None, tk_pref=None):
    if with_target:
        return fused_loss_forward(x, weight, bias, target, tm_pref=tm_pref,
                                  tn_pref=tn_pref, tk_pref=tk_pref)
    return linear_forward(x, weight, bias, tm_pref=tm_pref, tn_pref=tn_pref,
                          tk_pref=tk_pref)


# ---------------------------------------------------------------------------
# Reference (plain JAX, f32) for a sanity check
# ---------------------------------------------------------------------------
def reference_forward(x, weight, bias, target=None):
    logits = x @ weight.T + bias
    if target is None:
        return logits
    lse = jax.nn.logsumexp(logits, axis=-1)
    safe_t = jnp.clip(target, 0, logits.shape[-1] - 1)
    picked = jnp.take_along_axis(logits, safe_t[:, None], axis=-1)[:, 0]
    valid = (target != IGNORE_INDEX).astype(jnp.float32)
    return jnp.sum(valid * (lse - picked))


if __name__ == "__main__":
    key = jax.random.PRNGKey(0)
    kx, kw, kb, kt = jax.random.split(key, 4)

    # Main test: nice shapes, exercised with small explicit tiles so the grid is
    # (4 row x 4 vocab x 2 hidden) blocks -> all carry/init/finalize paths run.
    N, D, V = 256, 256, 512
    x = jax.random.normal(kx, (N, D), dtype=jnp.float32)
    # NOTE: the PyTorch module zero-inits weight/bias; deterministic random params
    # are used here so the kernels compute something non-trivial.
    weight = 0.05 * jax.random.normal(kw, (V, D), dtype=jnp.float32)
    bias = 0.05 * jax.random.normal(kb, (V,), dtype=jnp.float32)
    target = jax.random.randint(kt, (N,), 0, V, dtype=jnp.int32)
    target = target.at[0].set(IGNORE_INDEX)   # exercise ignore_index masking

    logits = jax.block_until_ready(
        word_predictor_forward(x, weight, bias, with_target=False,
                               tm_pref=64, tn_pref=128, tk_pref=128))
    loss = jax.block_until_ready(
        word_predictor_forward(x, weight, bias, target, with_target=True,
                               tm_pref=64, tn_pref=128, tk_pref=128))
    # Default (generation-aware) tile preferences.
    logits_default = jax.block_until_ready(
        word_predictor_forward(x, weight, bias, with_target=False))
    loss_default = jax.block_until_ready(
        word_predictor_forward(x, weight, bias, target, with_target=True))

    ref_logits = reference_forward(x, weight, bias)
    ref_loss = reference_forward(x, weight, bias, target)
    assert jnp.allclose(logits, ref_logits, atol=5e-2, rtol=2e-2), \
        float(jnp.max(jnp.abs(logits - ref_logits)))
    assert jnp.allclose(logits_default, ref_logits, atol=5e-2, rtol=2e-2), \
        float(jnp.max(jnp.abs(logits_default - ref_logits)))
    assert jnp.allclose(loss, ref_loss, rtol=1e-2, atol=1.0), (float(loss), float(ref_loss))
    assert jnp.allclose(loss_default, ref_loss, rtol=1e-2, atol=1.0), \
        (float(loss_default), float(ref_loss))

    # Odd-shape test: exercises row/vocab padding (N->128, V->512) and full-D K block.
    N2, D2, V2 = 120, 192, 500
    kx2, kw2, kb2, kt2 = jax.random.split(jax.random.PRNGKey(1), 4)
    x2 = jax.random.normal(kx2, (N2, D2), dtype=jnp.float32)
    w2 = 0.05 * jax.random.normal(kw2, (V2, D2), dtype=jnp.float32)
    b2 = 0.05 * jax.random.normal(kb2, (V2,), dtype=jnp.float32)
    t2 = jax.random.randint(kt2, (N2,), 0, V2, dtype=jnp.int32).at[3].set(IGNORE_INDEX)

    logits2 = jax.block_until_ready(
        word_predictor_forward(x2, w2, b2, with_target=False))
    loss2 = jax.block_until_ready(
        word_predictor_forward(x2, w2, b2, t2, with_target=True))
    ref_logits2 = reference_forward(x2, w2, b2)
    ref_loss2 = reference_forward(x2, w2, b2, t2)
    assert logits2.shape == (N2, V2)
    assert jnp.allclose(logits2, ref_logits2, atol=5e-2, rtol=2e-2), \
        float(jnp.max(jnp.abs(logits2 - ref_logits2)))
    assert jnp.allclose(loss2, ref_loss2, rtol=1e-2, atol=1.0), \
        (float(loss2), float(ref_loss2))

    print("KERNEL_OK")
</pallas_src>

<mosaic_0001>
module attributes {stable_mosaic.version = 11 : i64} {
  func.func @linear_tile_kernel(%arg0: i32, %arg1: i32, %arg2: i32, %arg3: memref<64x128xbf16, #tpu.memory_space<vmem>>, %arg4: memref<128x128xbf16, #tpu.memory_space<vmem>>, %arg5: memref<1x128xf32, #tpu.memory_space<vmem>>, %arg6: memref<64x128xf32, #tpu.memory_space<vmem>>, %arg7: memref<64x128xf32, #tpu.memory_space<vmem>>) attributes {dimension_semantics = [#tpu.dimension_semantics<parallel>, #tpu.dimension_semantics<parallel>, #tpu.dimension_semantics<arbitrary>], iteration_bounds = array<i64: 4, 4, 2>, scalar_prefetch = 0 : i64, scratch_operands = 1 : i64, tpu.core_type = #tpu.core_type<tc>, window_params = [{transform_indices = @transform_0, window_bounds = array<i64: 64, 128>}, {transform_indices = @transform_1, window_bounds = array<i64: 128, 128>}, {transform_indices = @transform_2, window_bounds = array<i64: 1, 128>}, {transform_indices = @transform_3, window_bounds = array<i64: 64, 128>}]} {
    %c0_i32 = arith.constant 0 : i32
    %0 = arith.cmpi eq, %arg2, %c0_i32 : i32
    %1 = arith.extui %0 : i1 to i32
    %c0_i32_0 = arith.constant 0 : i32
    %2 = arith.cmpi ne, %1, %c0_i32_0 : i32
    scf.if %2 {
      %cst_9 = arith.constant 0.000000e+00 : f32
      %12 = vector.broadcast %cst_9 : f32 to vector<64x128xf32>
      %c0_10 = arith.constant 0 : index
      %c0_11 = arith.constant 0 : index
      %13 = vector.load %arg7[%c0_10, %c0_11] : memref<64x128xf32, #tpu.memory_space<vmem>>, vector<64x128xf32>
      tpu.vector_store %arg7[%c0_10, %c0_11], %12 {strides = array<i32>} : memref<64x128xf32, #tpu.memory_space<vmem>>, vector<64x128xf32>,
    } else {
    }
    %c0 = arith.constant 0 : index
    %c0_1 = arith.constant 0 : index
    %3 = vector.load %arg7[%c0, %c0_1] : memref<64x128xf32, #tpu.memory_space<vmem>>, vector<64x128xf32>
    %c0_2 = arith.constant 0 : index
    %c0_3 = arith.constant 0 : index
    %4 = vector.load %arg3[%c0_2, %c0_3] : memref<64x128xbf16, #tpu.memory_space<vmem>>, vector<64x128xbf16>
    %c0_4 = arith.constant 0 : index
    %c0_5 = arith.constant 0 : index
    %5 = vector.load %arg4[%c0_4, %c0_5] : memref<128x128xbf16, #tpu.memory_space<vmem>>, vector<128x128xbf16>
    %cst = arith.constant dense<0.000000e+00> : vector<64x128xf32>
    %6 = tpu.matmul %4, %5, %cst {dimension_numbers = #tpu.dot_dimension_numbers<[1], [1], [0], [0], [0, 0, 1, 0], [], []>} : vector<64x128xbf16>, vector<128x128xbf16>, vector<64x128xf32> -> vector<64x128xf32>
    %7 = arith.addf %3, %6 : vector<64x128xf32>
    %c0_6 = arith.constant 0 : index
    %c0_7 = arith.constant 0 : index
    %8 = vector.load %arg7[%c0_6, %c0_7] : memref<64x128xf32, #tpu.memory_space<vmem>>, vector<64x128xf32>
    tpu.vector_store %arg7[%c0_6, %c0_7], %7 {strides = array<i32>} : memref<64x128xf32, #tpu.memory_space<vmem>>, vector<64x128xf32>,
    %c1_i32 = arith.constant 1 : i32
    %9 = arith.cmpi eq, %arg2, %c1_i32 : i32
    %10 = arith.extui %9 : i1 to i32
    %c0_i32_8 = arith.constant 0 : i32
    %11 = arith.cmpi ne, %10, %c0_i32_8 : i32
    scf.if %11 {
      %c0_9 = arith.constant 0 : index
      %c0_10 = arith.constant 0 : index
      %12 = vector.load %arg7[%c0_9, %c0_10] : memref<64x128xf32, #tpu.memory_space<vmem>>, vector<64x128xf32>
      %c0_11 = arith.constant 0 : index
      %c0_12 = arith.constant 0 : index
      %13 = vector.load %arg5[%c0_11, %c0_12] : memref<1x128xf32, #tpu.memory_space<vmem>>, vector<1x128xf32>
      %14 = vector.broadcast %13 : vector<1x128xf32> to vector<64x128xf32>
      %15 = arith.addf %12, %14 : vector<64x128xf32>
      %c0_13 = arith.constant 0 : index
      %c0_14 = arith.constant 0 : index
      %16 = vector.load %arg6[%c0_13, %c0_14] : memref<64x128xf32, #tpu.memory_space<vmem>>, vector<64x128xf32>
      tpu.vector_store %arg6[%c0_13, %c0_14], %15 {strides = array<i32>} : memref<64x128xf32, #tpu.memory_space<vmem>>, vector<64x128xf32>,
    } else {
    }
    return
  }
  func.func @transform_0(%arg0: i32, %arg1: i32, %arg2: i32) -> (i32, i32) {
    %c0_i32 = arith.constant 0 : i32
    return %arg0, %arg2 : i32, i32
  }
  func.func @transform_1(%arg0: i32, %arg1: i32, %arg2: i32) -> (i32, i32) {
    %c0_i32 = arith.constant 0 : i32
    return %arg1, %arg2 : i32, i32
  }
  func.func @transform_2(%arg0: i32, %arg1: i32, %arg2: i32) -> (i32, i32) {
    %c0_i32 = arith.constant 0 : i32
    %c0_i32_0 = arith.constant 0 : i32
    return %c0_i32, %arg1 : i32, i32
  }
  func.func @transform_3(%arg0: i32, %arg1: i32, %arg2: i32) -> (i32, i32) {
    %c0_i32 = arith.constant 0 : i32
    return %arg0, %arg1 : i32, i32
  }
}

</mosaic_0001>

<bundles_post_ra>
// kernel: word_predictor_forward.1
= control target key start
LH: loop header
LB: loop body
LE: loop exit
PB: predicated region body
PF: predicated region fallthrough
CT: control target
= control target key end

     0   :  { %s1471_s0 = inlined_call_operand.vmem [shape: bf16[256,256], index: 0, kind: input, shape index: {}]   ;;  %s1472_s1 = inlined_call_operand.vmem [shape: bf16[512,256], index: 1, kind: input, shape index: {}]   ;;  %s1473_s2 = inlined_call_operand.vmem [shape: f32[1,512], index: 2, kind: input, shape index: {}]   ;;  %s1474_s3 = inlined_call_operand.hbm [shape: f32[256,512], index: 3, kind: output, shape index: {}]  }
   0x1   :  { %1479 = sst [smem:[#allocation13_spill]] %s1471_s0 }
   0x2   :  { %1480 = sst [smem:[#allocation14_spill]] %s1472_s1 }
   0x3   :  { %1481 = sst [smem:[#allocation15_spill]] %s1473_s2 }
   0x4   :  { %1482 = sst [smem:[#allocation16_spill]] %s1474_s3 }
   0x5   :  { %8 = vsyncpa [#allocation6], 0 }
   0x6   :  { %10 = vsyncpa [#allocation6 + $0x1], 0  ;;  %s1170_s12 = smov 0   ;;  %s1172_s13 = smov 0  }
   0x7   :  { %s1174_s14 = smov 0   ;;  %s1176_s15 = smov 0  }
   0x8   :  { %s1178_s16 = smov 0   ;;  %s1180_s17 = smov 0  }
   0x9   :  { %s1182_s18 = smov 0   ;;  %s1184_s19 = smov 0  }
   0xa   :  { %s1186_s20 = smov 0   ;;  %s1188_s21 = smov 0  }
   0xb   :  { %s1190_s22 = smov 0   ;;  %s1192_s23 = smov 0  }
   0xc   :  { %s1194_s24 = smov 0   ;;  %s1196_s25 = smov 0  }
   0xd LB: > { %1483 = sst [smem:[#allocation8_spill]] %s1119_s19  ;;  %s28_s28 = sadd.s32 1, %s1131_s22  ;;  %s1143_s25 = sphi %s1196_s25, %s16_s25   ;;  %s1139_s24 = sphi %s1194_s24, %s1518_s24   ;;  %s1135_s23 = sphi %s1192_s23, %s1517_s23   ;;  %s1131_s22 = sphi %s1190_s22, %s1516_s22   ;;  %s1127_s21 = sphi %s1188_s21, %s1515_s21   ;;  %s1123_s20 = sphi %s1186_s20, %s1514_s20   ;;  %s1119_s19 = sphi %s1184_s19, %s1513_s19   ;;  %s1115_s18 = sphi %s1182_s18, %s1512_s18   ;;  %s1111_s17 = sphi %s1180_s17, %s1511_s17   ;;  %s1107_s16 = sphi %s1178_s16, %s1510_s16   ;;  %s1103_s15 = sphi %s1176_s15, %s1509_s15   ;;  %s1099_s14 = sphi %s1174_s14, %s1508_s14   ;;  %s1095_s13 = sphi %s1172_s13, %s1507_s13   ;;  %s1091_s12 = sphi %s1170_s12, %s1506_s12  }
   0xe   : > { %1484 = sst [smem:[#allocation9_spill]] %s1127_s21  ;;  %s31_s29 = sadd.s32 1, %s1135_s23 }
   0xf   : > { %p29_p0 = scmp.ge.s32.totalorder %s28_s28, 2  ;;  %s35_s30 = sadd.s32 1, %s1139_s24 }
  0x10   : > { %s44_s4 = sadd.s32 1, %s1115_s18  ;;  %p51_p1 = scmp.ne.s32.totalorder %s1115_s18, %s1111_s17 }
  0x11   : > { %s1520_s28 = smov (%p29_p0, %s28_s28), 0  ;;  %s1522_s29 = smov (!%p29_p0, %s31_s29), %s1135_s23 }
  0x12   : > { %1485 = sst [smem:[#allocation10_spill]] %s1520_s28  ;;  %s40_s5 = ssub.s32 %s1131_s22, %s1520_s28 }
  0x13   : > { %p52_p2 = scmp.eq.s32.totalorder %s1143_s25, 0  ;;  %p33_p3 = scmp.ge.s32.totalorder %s1522_s29, 4 }
  0x14   : > { %s72_s6 = sadd.s32 1, %s1107_s16  ;;  %p79_p5 = scmp.ne.s32.totalorder %s1107_s16, %s1103_s15 }
  0x15   : > { %p1255_p4 = por %p52_p2, %p51_p1  ;;  %s1524_s29 = smov (%p33_p3, %s1522_s29), 0 }
  0x16   : > { %1487 = sst [smem:[#allocation11_spill]] %s1524_s29  ;;  %s1526_s30 = smov (!%p33_p3, %s35_s30), %s1139_s24 }
  0x17   : > { %s67_s8 = ssub.s32 %s1135_s23, %s1524_s29  ;;  %p1266_p6 = por %p79_p5, %p52_p2 }
  0x18   : > { %p37_p7 = scmp.ge.s32.totalorder %s1526_s30, 4  ;;  %s69_s10 = sor.u32 %s67_s8, %s40_s5 }
  0x19   : > { %p70_p8 = scmp.eq.s32.totalorder %s69_s10, 0  ;;  %s126_s11 = sadd.s32 1, %s1099_s14 }
  0x1a   : > { %s1528_s30 = smov (%p37_p7, %s1526_s30), 0  ;;  %p136_p9 = scmp.ne.s32.totalorder %s1099_s14, %s1095_s13 }
  0x1b   : > { %1489 = sst [smem:[#allocation12_spill]] %s1528_s30  ;;  %s39_s26 = ssub.s32 %s1139_s24, %s1528_s30 }
  0x1c   : > { %s1274_s27 = scalar_select %p70_p8, %s1107_s16, %s72_s6  }
  0x1d   : > { %s41_s28 = sor.u32 %s40_s5, %s39_s26  ;;  %s123_s29 = sor.u32 %s67_s8, %s39_s26 }
  0x1e   : > { %p42_p10 = scmp.eq.s32.totalorder %s41_s28, 0  ;;  %p124_p11 = scmp.eq.s32.totalorder %s123_s29, 0 }
  0x1f   : > { %s1490_s3 = sadd.s32 4294967295, %s1143_s25   ;;  %p142_p13 = scmp.ne.s32.totalorder %s1095_s13, %s1091_s12 }
  0x20   : > { %p137_p12 = scmp.eq.s32.totalorder %s1490_s3, 31  ;;  %s1492_s2 = sadd.s32 4294967294, %s1143_s25  }
  0x21   : > { %s1285_s21 = scalar_select %p42_p10, %s1115_s18, %s44_s4  }
  0x22   : > { %s1288_s19 = scalar_select %p124_p11, %s1099_s14, %s126_s11  }
  0x23   : > { %p1290_p0 = por %p137_p12, %p136_p9  ;;  %p143_p1 = scmp.eq.s32.totalorder %s1492_s2, 31 }
  0x24   : > { %p777_p3 = scmp.ge.s32.totalorder %s1143_s25, 32 }
  0x25   : > { %p1296_p2 = por %p143_p1, %p142_p13 }
  0x26   : > { %159 = sbr.rel (%p777_p3) target bundleno = 80 (0x50), region = 16 }
  0x2d   : > { %162 = sbr.rel (!%p1255_p4) target bundleno = 60 (0x3c), region = 20  ;;  %s164_s3 = sand.u32 (%p1255_p4), 1, %s1115_s18  }
  0x2e   : > { %s811_s26 = sshll.u32 (%p1255_p4), %s1139_s24, 4  ;;  %s778_s28 = sshll.u32 (%p1255_p4), %s164_s3, 5 }
  0x2f   : > { %s169_s29 = sadd.s32 (%p1255_p4), %s1131_s22, %s811_s26  ;;  %s1494_s0 = sld [smem:[#allocation13_spill]] (%p1255_p4) }
  0x30   : > { %s781_s4 = sshll.u32 (%p1255_p4), %s169_s29, 2  ;;  %s166_s11 = scalar_lea.vmem (%p1255_p4), [#allocation3], %s778_s28 }
  0x35   : > { %s171_s8 = scalar_lea.vmem %s1494_s0, %s781_s4 }
  0x36   : > { %v187_v0 = vld [vmem:[%s171_s8] sm:$0xf]  ;;  %v189_v1 = vld [vmem:[%s171_s8 + $0x8] sm:$0xf]  ;;  %v191_v2 = vld [vmem:[%s171_s8 + $0x10] sm:$0xf] }
  0x37   : > { %188 = vst [vmem:[%s166_s11] sm:$0xf] %v187_v0  ;;  %190 = vst [vmem:[%s166_s11 + $0x4] sm:$0xf] %v189_v1  ;;  %v193_v3 = vld [vmem:[%s171_s8 + $0x18] sm:$0xf] }
  0x38   : > { %192 = vst [vmem:[%s166_s11 + $0x8] sm:$0xf] %v191_v2  ;;  %v195_v4 = vld [vmem:[%s171_s8 + $0x20] sm:$0xf]  ;;  %v197_v5 = vld [vmem:[%s171_s8 + $0x28] sm:$0xf] }
  0x39   : > { %194 = vst [vmem:[%s166_s11 + $0xc] sm:$0xf] %v193_v3  ;;  %196 = vst [vmem:[%s166_s11 + $0x10] sm:$0xf] %v195_v4  ;;  %v199_v6 = vld [vmem:[%s171_s8 + $0x30] sm:$0xf] }
  0x3a   : > { %198 = vst [vmem:[%s166_s11 + $0x14] sm:$0xf] %v197_v5  ;;  %v201_v7 = vld [vmem:[%s171_s8 + $0x38] sm:$0xf]  ;;  %200 = vst [vmem:[%s166_s11 + $0x18] sm:$0xf] %v199_v6 }
  0x3b   : > { %202 = vst [vmem:[%s166_s11 + $0x1c] sm:$0xf] %v201_v7 }
  0x3c PF: > { %241 = sbr.rel (!%p1266_p6) target bundleno = 80 (0x50), region = 61  ;;  %s243_s7 = sand.u32 (%p1266_p6), 1, %s1107_s16  }
  0x3d   : > { %s812_s3 = sshll.u32 (%p1266_p6), %s1135_s23, 5  ;;  %s782_s26 = sshll.u32 (%p1266_p6), %s243_s7, 6 }
  0x3e   : > { %s248_s28 = sadd.s32 (%p1266_p6), %s1131_s22, %s812_s3  ;;  %s1495_s1 = sld [smem:[#allocation14_spill]] (%p1266_p6) }
  0x3f   : > { %s785_s29 = sshll.u32 (%p1266_p6), %s248_s28, 2  ;;  %s245_s9 = scalar_lea.vmem (%p1266_p6), [#allocation4], %s782_s26 }
  0x44   : > { %s1317_s2 = scalar_lea.vmem %s1495_s1, %s785_s29 }
  0x45   : > { %v266_v8 = vld [vmem:[%s1317_s2] sm:$0xf]  ;;  %v268_v9 = vld [vmem:[%s1317_s2 + $0x8] sm:$0xf]  ;;  %v270_v10 = vld [vmem:[%s1317_s2 + $0x10] sm:$0xf] }
  0x46   : > { %267 = vst [vmem:[%s245_s9] sm:$0xf] %v266_v8  ;;  %269 = vst [vmem:[%s245_s9 + $0x4] sm:$0xf] %v268_v9  ;;  %v272_v11 = vld [vmem:[%s1317_s2 + $0x18] sm:$0xf] }
  0x47   : > { %271 = vst [vmem:[%s245_s9 + $0x8] sm:$0xf] %v270_v10  ;;  %v274_v12 = vld [vmem:[%s1317_s2 + $0x20] sm:$0xf]  ;;  %v276_v13 = vld [vmem:[%s1317_s2 + $0x28] sm:$0xf] }
  0x48   : > { %273 = vst [vmem:[%s245_s9 + $0xc] sm:$0xf] %v272_v11  ;;  %275 = vst [vmem:[%s245_s9 + $0x10] sm:$0xf] %v274_v12  ;;  %v278_v14 = vld [vmem:[%s1317_s2 + $0x30] sm:$0xf] }
  0x49   : > { %277 = vst [vmem:[%s245_s9 + $0x14] sm:$0xf] %v276_v13  ;;  %v280_v15 = vld [vmem:[%s1317_s2 + $0x38] sm:$0xf]  ;;  %v282_v16 = vld [vmem:[%s1317_s2 + $0x40] sm:$0xf] }
  0x4a   : > { %279 = vst [vmem:[%s245_s9 + $0x18] sm:$0xf] %v278_v14  ;;  %281 = vst [vmem:[%s245_s9 + $0x1c] sm:$0xf] %v280_v15  ;;  %v284_v17 = vld [vmem:[%s1317_s2 + $0x48] sm:$0xf] }
  0x4b   : > { %283 = vst [vmem:[%s245_s9 + $0x20] sm:$0xf] %v282_v16  ;;  %v286_v18 = vld [vmem:[%s1317_s2 + $0x50] sm:$0xf]  ;;  %v288_v19 = vld [vmem:[%s1317_s2 + $0x58] sm:$0xf] }
  0x4c   : > { %285 = vst [vmem:[%s245_s9 + $0x24] sm:$0xf] %v284_v17  ;;  %287 = vst [vmem:[%s245_s9 + $0x28] sm:$0xf] %v286_v18  ;;  %v290_v20 = vld [vmem:[%s1317_s2 + $0x60] sm:$0xf] }
  0x4d   : > { %289 = vst [vmem:[%s245_s9 + $0x2c] sm:$0xf] %v288_v19  ;;  %v292_v21 = vld [vmem:[%s1317_s2 + $0x68] sm:$0xf]  ;;  %v294_v22 = vld [vmem:[%s1317_s2 + $0x70] sm:$0xf] }
  0x4e   : > { %291 = vst [vmem:[%s245_s9 + $0x30] sm:$0xf] %v290_v20  ;;  %293 = vst [vmem:[%s245_s9 + $0x34] sm:$0xf] %v292_v21  ;;  %v296_v23 = vld [vmem:[%s1317_s2 + $0x78] sm:$0xf] }
  0x4f   : > { %295 = vst [vmem:[%s245_s9 + $0x38] sm:$0xf] %v294_v22  ;;  %297 = vst [vmem:[%s245_s9 + $0x3c] sm:$0xf] %v296_v23 }
  0x50 PF: > { %p786_p4 = scmp.ge.s32.totalorder %s1143_s25, 1  ;;  %p357_p5 = scmp.lt.s32.totalorder %s1143_s25, 33 }
  0x52   : > { %p358_p6 = pnand %p786_p4, %p357_p5 }
  0x53   : > { %s364_s8 = sand.u32 (!%p358_p6), 1, %s1111_s17   ;;  %s371_s11 = sand.u32 (!%p358_p6), 1, %s1103_s15  }
  0x54   : > { %361 = sbr.rel (%p358_p6) target bundleno = 430 (0x1ae), region = 106  ;;  %s787_s7 = sshll.u32 (!%p358_p6), %s364_s8, 5 }
  0x55   : > { %s788_s3 = sshll.u32 (!%p358_p6), %s371_s11, 6  ;;  %s398_s26 = sand.u32 (!%p358_p6), 1, %s1095_s13  }
  0x56   : > { %p403_p7 = scmp.lt.s32.totalorder (!%p358_p6), %s1123_s20, 3  ;;  %s789_s28 = sshll.u32 (!%p358_p6), %s398_s26, 6 }
  0x57   : > { %s1496_s2 = sld [smem:[#allocation15_spill]] (!%p358_p6)  ;;  %s1350_s0 = scalar_lea.vmem (!%p358_p6), [#allocation3], %s787_s7 }
  0x58   : > { %s1352_s1 = scalar_lea.vmem (!%p358_p6), [#allocation4], %s788_s3  ;;  %s1354_s30 = scalar_lea.vmem (!%p358_p6), [#allocation5], %s789_s28 }
  0x59   : > { %s1497_s15 = sld [smem:[#allocation8_spill]] (!%p358_p6) }
  0x5b   : > { %s1344_s29 = scalar_select %p403_p7, %s1123_s20, 3 }
  0x5d   : > { %s405_s9 = scalar_lea.vmem %s1496_s2, %s1344_s29 }
  0x5f   : > { %p790_p8 = scmp.ne.s32.totalorder %s1497_s15, 0 }
  0x60   : > { %v1145_v24 = vmov (!%p790_p8), 0.0  }
  0x61   : > { %411 = sbr.rel (%p790_p8) target bundleno = 104 (0x68), region = 118  ;;  %412 = vst [vmem:[#allocation2] sm:$0xff] (!%p790_p8), %v1145_v24  ;;  %413 = vst [vmem:[#allocation2 + $0x8] sm:$0xff] (!%p790_p8), %v1145_v24 }
  0x62   : > { %414 = vst [vmem:[#allocation2 + $0x10] sm:$0xff] (!%p790_p8), %v1145_v24  ;;  %415 = vst [vmem:[#allocation2 + $0x18] sm:$0xff] (!%p790_p8), %v1145_v24 }
  0x63   : > { %416 = vst [vmem:[#allocation2 + $0x20] sm:$0xff] (!%p790_p8), %v1145_v24  ;;  %417 = vst [vmem:[#allocation2 + $0x28] sm:$0xff] (!%p790_p8), %v1145_v24 }
  0x64   : > { %418 = vst [vmem:[#allocation2 + $0x30] sm:$0xff] (!%p790_p8), %v1145_v24  ;;  %419 = vst [vmem:[#allocation2 + $0x38] sm:$0xff] (!%p790_p8), %v1145_v24 }
  0x68 PF: > { %v989_v25 = vld [vmem:[%s1352_s1] sm:$0xff]   ;;  %v990_v26 = vld [vmem:[%s1352_s1 + $0x8] sm:$0xff]   ;;  %v991_v27 = vld [vmem:[%s1352_s1 + $0x10] sm:$0xff]  }
  0x69   : > { %826 = vmatprep.subr.bf16.mxu0 %v989_v25  ;;  %850 = vmatprep.subr.bf16.mxu1 %v989_v25  ;;  %v997_v28 = vld [vmem:[%s1350_s0] sm:$0xff]   ;;  %v998_v29 = vld [vmem:[%s1350_s0 + $0x10] sm:$0xff]   ;;  %v992_v30 = vld [vmem:[%s1352_s1 + $0x18] sm:$0xff]  }
  0x6a   : > { %827 = vmatpush3.bf16.xpose.msra.mxu0 %v989_v25  ;;  %858 = vmatpush3.bf16.xpose.msra.mxu1 %v989_v25  ;;  %v993_v31 = vld [vmem:[%s1352_s1 + $0x20] sm:$0xff]   ;;  %v994_v32 = vld [vmem:[%s1352_s1 + $0x28] sm:$0xff]   ;;  %v995_v33 = vld [vmem:[%s1352_s1 + $0x30] sm:$0xff]  }
  0x6b   : > { %828 = vmatprep.subr.bf16.mxu0 %v990_v26  ;;  %851 = vmatprep.subr.bf16.mxu1 %v990_v26  ;;  %v996_v34 = vld [vmem:[%s1352_s1 + $0x38] sm:$0xff]   ;;  %v999_v35 = vld [vmem:[%s1350_s0 + $0x8] sm:$0xff]   ;;  %v422_v37 = vld [vmem:[#allocation2 + $0x10] sm:$0xff] }
  0x6c   : > { %842 = vmatprep.mubr.bf16.mxu0 %v997_v28  ;;  %846 = vmatprep.mubr.bf16.mxu1 %v998_v29  ;;  %v1000_v36 = vld [vmem:[%s1350_s0 + $0x18] sm:$0xff]   ;;  %v426_v38 = vld [vmem:[#allocation2 + $0x30] sm:$0xff]  ;;  %v420_v39 = vld [vmem:[#allocation2] sm:$0xff]  ;;  %s1498_s0 = sld [smem:[#allocation8_spill]] }
  0x6d   : > { %v424_v40 = vld [vmem:[#allocation2 + $0x20] sm:$0xff]  ;;  %v423_v43 = vld [vmem:[#allocation2 + $0x18] sm:$0xff]  ;;  %v421_v49 = vld [vmem:[#allocation2 + $0x8] sm:$0xff] }
  0x6e   : > { %v427_v44 = vld [vmem:[#allocation2 + $0x38] sm:$0xff]  ;;  %v425_v50 = vld [vmem:[#allocation2 + $0x28] sm:$0xff] }
  0x72   : > { %829 = vmatpush3.bf16.xpose.msra.mxu0 %v990_v26  ;;  %859 = vmatpush3.bf16.xpose.msra.mxu1 %v990_v26  ;;  %p803_p9 = scmp.ne.s32.totalorder %s1498_s0, 1 }
  0x73   : > { %830 = vmatprep.subr.bf16.mxu0 %v991_v27  ;;  %852 = vmatprep.subr.bf16.mxu1 %v991_v27  ;;  %v804_v62 = vld [vmem:[%s405_s9] ss:$0 sm:$0xff] (!%p803_p9) }
  0x7a   : > { %831 = vmatpush3.bf16.xpose.msra.mxu0 %v991_v27  ;;  %860 = vmatpush3.bf16.xpose.msra.mxu1 %v991_v27 }
  0x7b   : > { %832 = vmatprep.subr.bf16.mxu0 %v992_v30  ;;  %853 = vmatprep.subr.bf16.mxu1 %v992_v30 }
  0x82   : > { %833 = vmatpush3.bf16.xpose.msra.mxu0 %v992_v30  ;;  %861 = vmatpush3.bf16.xpose.msra.mxu1 %v992_v30 }
  0x83   : > { %834 = vmatprep.subr.bf16.mxu0 %v993_v31  ;;  %854 = vmatprep.subr.bf16.mxu1 %v993_v31 }
  0x8a   : > { %835 = vmatpush3.bf16.xpose.msra.mxu0 %v993_v31  ;;  %862 = vmatpush3.bf16.xpose.msra.mxu1 %v993_v31 }
  0x8b   : > { %836 = vmatprep.subr.bf16.mxu0 %v994_v32  ;;  %855 = vmatprep.subr.bf16.mxu1 %v994_v32 }
  0x92   : > { %837 = vmatpush3.bf16.xpose.msra.mxu0 %v994_v32  ;;  %863 = vmatpush3.bf16.xpose.msra.mxu1 %v994_v32 }
  0x93   : > { %838 = vmatprep.subr.bf16.mxu0 %v995_v33  ;;  %856 = vmatprep.subr.bf16.mxu1 %v995_v33 }
  0x9a   : > { %839 = vmatpush3.bf16.xpose.msra.mxu0 %v995_v33  ;;  %864 = vmatpush3.bf16.xpose.msra.mxu1 %v995_v33 }
  0x9b   : > { %840 = vmatprep.subr.bf16.mxu0 %v996_v34  ;;  %857 = vmatprep.subr.bf16.mxu1 %v996_v34 }
  0xa2   : > { %841 = vmatpush3.bf16.xpose.msra.mxu0 %v996_v34  ;;  %865 = vmatpush3.bf16.xpose.msra.mxu1 %v996_v34 }
  0xa9   : > { %843 = vmatmul.mubr.bf16.vlgmr.msra.gmra.mrb[0].mxu0 %v999_v35  ;;  %847 = vmatmul.mubr.bf16.vlgmr.msra.gmra.mrb[0].mxu1 %v1000_v36 }
 0x17c   : > { %v844_v41 = vpop.f32.mrb[0].mxu0  ;;  %v848_v42 = vpop.f32.mrb[0].mxu1  ;;  %608 = sbr.rel (%p803_p9) target bundleno = 398 (0x18e), region = 122 }
 0x17d   : > { %v591_v45 = vadd.f32 %v844_v41, %v422_v37  ;;  %v595_v46 = vadd.f32 %v848_v42, %v426_v38  ;;  %v558_v47 = vpop.f32.mrb[1].mxu0  ;;  %v574_v48 = vpop.f32.mrb[1].mxu1 }
 0x17e   : > { %v589_v51 = vadd.f32 %v558_v47, %v420_v39  ;;  %v593_v52 = vadd.f32 %v574_v48, %v424_v40  ;;  %v845_v53 = vpop.f32.mrb[2].mxu0  ;;  %v849_v54 = vpop.f32.mrb[2].mxu1 }
 0x17f   : > { %599 = vst [vmem:[#allocation2 + $0x10] sm:$0xff] %v591_v45  ;;  %603 = vst [vmem:[#allocation2 + $0x30] sm:$0xff] %v595_v46  ;;  %v592_v55 = vadd.f32 %v845_v53, %v423_v43  ;;  %v596_v56 = vadd.f32 %v849_v54, %v427_v44  ;;  %v561_v57 = vpop.f32.mrb[3].mxu0  ;;  %v577_v58 = vpop.f32.mrb[3].mxu1 }
 0x180   : > { %597 = vst [vmem:[#allocation2] sm:$0xff] %v589_v51  ;;  %601 = vst [vmem:[#allocation2 + $0x20] sm:$0xff] %v593_v52  ;;  %v590_v59 = vadd.f32 %v561_v57, %v421_v49  ;;  %v594_v60 = vadd.f32 %v577_v58, %v425_v50 }
 0x181   : > { %600 = vst [vmem:[#allocation2 + $0x18] sm:$0xff] %v592_v55  ;;  %604 = vst [vmem:[#allocation2 + $0x38] sm:$0xff] %v596_v56 }
 0x182   : > { %598 = vst [vmem:[#allocation2 + $0x8] sm:$0xff] %v590_v59  ;;  %602 = vst [vmem:[#allocation2 + $0x28] sm:$0xff] %v594_v60 }
 0x186   : > { %v611_v2 = vld [vmem:[#allocation2 + $0x10] sm:$0xff] }
 0x187   : > { %v609_v61 = vld [vmem:[#allocation2] sm:$0xff]  ;;  %v626_v5 = vadd.f32 %v804_v62, %v611_v2  ;;  %v615_v9 = vld [vmem:[#allocation2 + $0x30] sm:$0xff] }
 0x188   : > { %v624_v0 = vadd.f32 %v804_v62, %v609_v61  ;;  %v612_v3 = vld [vmem:[#allocation2 + $0x18] sm:$0xff]  ;;  %v613_v4 = vld [vmem:[#allocation2 + $0x20] sm:$0xff]  ;;  %v630_v12 = vadd.f32 %v804_v62, %v615_v9 }
 0x189   : > { %v610_v63 = vld [vmem:[#allocation2 + $0x8] sm:$0xff]  ;;  %v627_v6 = vadd.f32 %v804_v62, %v612_v3  ;;  %v628_v7 = vadd.f32 %v804_v62, %v613_v4  ;;  %v616_v10 = vld [vmem:[#allocation2 + $0x38] sm:$0xff]  ;;  %634 = vst [vmem:[%s1354_s30 + $0x10] sm:$0xff] %v626_v5 }
 0x18a   : > { %v625_v1 = vadd.f32 %v804_v62, %v610_v63  ;;  %v614_v8 = vld [vmem:[#allocation2 + $0x28] sm:$0xff]  ;;  %632 = vst [vmem:[%s1354_s30] sm:$0xff] %v624_v0  ;;  %v631_v13 = vadd.f32 %v804_v62, %v616_v10  ;;  %638 = vst [vmem:[%s1354_s30 + $0x30] sm:$0xff] %v630_v12 }
 0x18b   : > { %v629_v11 = vadd.f32 %v804_v62, %v614_v8  ;;  %635 = vst [vmem:[%s1354_s30 + $0x18] sm:$0xff] %v627_v6  ;;  %636 = vst [vmem:[%s1354_s30 + $0x20] sm:$0xff] %v628_v7 }
 0x18c   : > { %633 = vst [vmem:[%s1354_s30 + $0x8] sm:$0xff] %v625_v1  ;;  %639 = vst [vmem:[%s1354_s30 + $0x38] sm:$0xff] %v631_v13 }
 0x18d   : > { %637 = vst [vmem:[%s1354_s30 + $0x28] sm:$0xff] %v629_v11 }
 0x18e PF: > { %s1500_s11 = sld [smem:[#allocation9_spill]]  ;;  %s656_s28 = sshll.u32 %s1354_s30, 4  ;;  %s1386_s28 = int_to_ptr.vmem [resolvable:$true] %s656_s28 }
 0x18f   : > { %s1501_s2 = sld [smem:[#allocation16_spill]]  ;;  %s1395_s15 = scalar_lea.sflag [#allocation6], %s398_s26 }
 0x190   : > { %s1001_s0 = scalar_lea.vmem %s1386_s28, 1024 }
 0x191   : > { %p1002_p10 = scmp.ne.s32.totalorder %s1386_s28, %s1001_s0 }
 0x193   : > { %p1003_p11 = pnand %p1002_p10, %p1290_p0 }
 0x194   : > { %s813_s7 = sshll.u32 %s1500_s11, 5 }
 0x195   : > { %s653_s3 = sadd.s32 %s1123_s20, %s813_s7  ;;  %p1004_p12 = pneg %p1003_p11 }
 0x196   : > { %s808_s29 = sshll.u32 %s653_s3, 7  ;;  %s1146_s20 = smov [#allocation5]  }
 0x197   : > { %s1391_s9 = scalar_lea.hbm %s1501_s2, %s808_s29  ;;  %s1005_s30 = sshll.u32 %s1146_s20, 4  ;;  %s1006_s30 = int_to_ptr.vmem [resolvable:$false] %s1005_s30 }
 0x198   : > { %s1007_s1 = scalar_lea.vmem %s1006_s30, 2048  ;;  %p1008_p13 = scmp.lt.s32.totalorder %s1386_s28, %s1006_s30 }
 0x199   : > { %p1009_p1 = scmp.lt.s32.totalorder %s1007_s1, %s1001_s0 }
 0x19b   : > { %p1010_p3 = por %p1009_p1, %p1008_p13 }
 0x19d   : > { %p1011_p4 = pnand %p1010_p3, %p1004_p12 }
 0x19f   : > { %1014 = shalt.err (!%p1011_p4)
}
 0x1a0   : > { %s1015_s26 = scalar_lea.hbm %s1391_s9, 1024  ;;  %s1019_s11 = scalar_lea.hbm %s1501_s2, 16384 }
 0x1a1   : > { %p1016_p5 = scmp.ne.s32.totalorder %s1391_s9, %s1015_s26  ;;  %p1020_p8 = scmp.lt.u32.totalorder %s1391_s9, %s1501_s2 }
 0x1a2   : > { %p1021_p9 = scmp.lt.u32.totalorder %s1019_s11, %s1015_s26  ;;  %p1023_p11 = scmp.lt.u32.totalorder %s1015_s26, %s1391_s9 }
 0x1a3   : > { %p1017_p6 = pnand %p1016_p5, %p1290_p0 }
 0x1a4   : > { %p1022_p10 = por %p1021_p9, %p1020_p8 }
 0x1a5   : > { %p1018_p7 = pneg %p1017_p6 }
 0x1a6   : > { %p1024_p12 = por %p1023_p11, %p1022_p10 }
 0x1a8   : > { %p1025_p13 = pnand %p1024_p12, %p1018_p7 }
 0x1aa   : > { %1028 = shalt.err (!%p1025_p13)
}
 0x1ab   : > { %s1147_s29 = smov 128   ;;  %s1148_s4 = smov 512  }
 0x1ac   : > { %s1149_s5 = smov 8  }
 0x1ad   : > { %866 = dma.vmem_to_hbm [thread:$0]  (%p1290_p0), %s1386_s28, 1024, %s1391_s9, %s1395_s15, %s1147_s29, %s1148_s4, %s1149_s5  }
 0x1ae PF: > { %p872_p1 = scmp.ge.s32.totalorder %s1143_s25, 2  ;;  %s671_s0 = sand.u32 1, %s1091_s12  }
 0x1af   : > { %s672_s20 = scalar_lea.sflag [#allocation6], %s671_s0 }
 0x1b0   : > { %p869_p3 = pnand %p872_p1, %p1296_p2 }
 0x1b2   : > { %1086 = dma.done.wait (!%p869_p3), %s672_s20, 1024  }
 0x1b3   : > { %1088 = vsyncadd (!%p869_p3), %s672_s20, 4294966272  ;;  %s16_s25 = sadd.s32 1, %s1143_s25   ;;  %s1503_s10 = sld [smem:[#allocation10_spill]] }
 0x1b4   : > { %p1424_p4 = scmp.ge.s32.totalorder %s16_s25, 34   ;;  %s1504_s6 = sld [smem:[#allocation11_spill]] }
 0x1b5   : > { %s1505_s28 = sld [smem:[#allocation12_spill]]  ;;  %s1506_s12 = smov %s1095_s13 }
 0x1b6   : > { %s1507_s13 = smov %s1099_s14  ;;  %s1508_s14 = smov %s1288_s19 }
 0x1b7   : > { %s1509_s15 = smov %s1107_s16  ;;  %s1510_s16 = smov %s1274_s27 }
 0x1b8   : > { %s1511_s17 = smov %s1115_s18  ;;  %s1512_s18 = smov %s1285_s21 }
 0x1b9   : > { %s1513_s19 = smov %s1131_s22  ;;  %s1514_s20 = smov %s1135_s23 }
 0x1ba   : > { %s1515_s21 = smov %s1139_s24  ;;  %s1516_s22 = smov %s1503_s10 }
 0x1bb   : > { %s1517_s23 = smov %s1504_s6  ;;  %s1518_s24 = smov %s1505_s28 }
 0x1bc   :  { %15 = sbr.rel (!%p1424_p4) target bundleno = 13 (0xd), region = 173 }
 0x1c3   :  { %677 = vsyncpa [#allocation6], 1 }
 0x1c4   :  { %679 = vsyncpa [#allocation6 + $0x1], 1 }

</bundles_post_ra>
